<compile_context>
chip_gen: v5e
topology: v5e:2x2
jax: 0.10.0
libtpu: 0.0.40
codegen_flags: <defaults>
</compile_context>

<pallas_src>
import functools
import math

import jax
import jax.numpy as jnp
from jax.experimental import pallas as pl
from jax.experimental.pallas import tpu as pltpu


def _biotic_loss_kernel(q_ref, k_ref, pos_ref, pcnt_ref, num_ref, acc_sc, *,
                        row_tile, col_tile, batch, padded):
    """One (row_tile x col_tile) step of the flash-style contrastive loss.

    q_ref:    [Tr, D]  bf16  rows of (out @ W) / temperature (precomputed)
    k_ref:    [Tc, D]  bf16  rows of out (similarity "keys")
    pos_ref:  [Tr, Tc] int8  dense tile of positive-pair counts
    pcnt_ref: [Tr, 1]  f32   per-row positive counts (precomputed)
    num_ref:  [Tr, 1]  f32   sum_pos(sim) - pos_count * masked-LSE  (output)
    acc_sc:   [Tr, 4]  f32   col 0 = running max, 1 = running exp-sum,
                             2 = running sum(pos*sim), 3 = unused
    """
    i = pl.program_id(0)          # row tile (parallel across TCs)
    j = pl.program_id(1)          # col tile (online reduction)

    @pl.when(j == 0)
    def _():
        lane = jax.lax.broadcasted_iota(jnp.int32, acc_sc.shape, 1)
        acc_sc[...] = jnp.where(lane == 0, -jnp.inf, 0.0)

    # sim tile = q_i . k_j^T (q already carries the 1/temperature scale).
    s = jax.lax.dot_general(
        q_ref[...], k_ref[...],
        dimension_numbers=(((1,), (1,)), ((), ())),
        preferred_element_type=jnp.float32)                       # [Tr, Tc]

    acc = acc_sc[...]
    m_prev = acc[:, 0:1]
    l_prev = acc[:, 1:2]
    ps_prev = acc[:, 2:3]

    # Positive-pair numerator uses the raw sim (the row-max shift cancels in
    # log_prob); padded columns have pos == 0 and finite sim, so they add 0.
    pos = pos_ref[...].astype(jnp.float32)
    ps_new = ps_prev + jnp.sum(pos * s, axis=1, keepdims=True)

    def _update(p, m_new):
        l_new = l_prev * jnp.exp(m_prev - m_new) + jnp.sum(
            p, axis=1, keepdims=True)
        lane = jax.lax.broadcasted_iota(jnp.int32, acc_sc.shape, 1)
        acc_sc[...] = jnp.where(
            lane == 0, m_new,
            jnp.where(lane == 1, l_new, jnp.where(lane == 2, ps_new, 0.0)))

    # Only the (at most one per row tile) column tile crossing the diagonal
    # -- plus the final, padded column tile -- pays the iota/select masking.
    diag_here = jnp.logical_and(i * row_tile < (j + 1) * col_tile,
                                j * col_tile < (i + 1) * row_tile)
    if padded:
        needs_mask = jnp.logical_or(diag_here, (j + 1) * col_tile > batch)
    else:
        needs_mask = diag_here

    @pl.when(needs_mask)
    def _():
        row_ids = i * row_tile + jax.lax.broadcasted_iota(jnp.int32, s.shape, 0)
        col_ids = j * col_tile + jax.lax.broadcasted_iota(jnp.int32, s.shape, 1)
        s_eff = s
        if padded:
            # Padded columns are excluded from both the max and the exp-sum.
            s_eff = jnp.where(col_ids >= batch, -jnp.inf, s_eff)
        m_new = jnp.maximum(m_prev, jnp.max(s_eff, axis=1, keepdims=True))
        # The diagonal stays in the max (matches torch's logits_max) but is
        # excluded from the denominator exp-sum, exactly like logits_mask.
        p = jnp.where(row_ids == col_ids, 0.0, jnp.exp(s_eff - m_new))
        _update(p, m_new)

    @pl.when(jnp.logical_not(needs_mask))
    def _():
        m_new = jnp.maximum(m_prev, jnp.max(s, axis=1, keepdims=True))
        _update(jnp.exp(s - m_new), m_new)

    @pl.when(j == pl.num_programs(1) - 1)
    def _():
        fin = acc_sc[...]
        lse = fin[:, 0:1] + jnp.log(fin[:, 1:2])
        pc = pcnt_ref[...]
        # Rows with no positive pairs (including padded rows) contribute 0;
        # the guard also keeps 0 * (-inf) from turning into NaN.
        num_ref[...] = fin[:, 2:3] - jnp.where(pc > 0, pc * lse, 0.0)


def _round_up(x, m):
    return -(-x // m) * m


def biotic_loss(out, W, rows, cols, *, temperature=0.07,
                scale_by_temperature=True, row_tile=None, col_tile=None):
    """JAX/Pallas equivalent of BioticLoss.forward.

    out:  [B, D] float embeddings
    W:    [D, D] learnable transform
    rows, cols: int32 COO indices of the sparse positive-pair mask
    """
    B, D = out.shape
    nnz = int(rows.shape[0])

    # --- tile selection + padding -------------------------------------------
    # Small B: full-extent blocks (always layout-legal).  Large B: 256-row /
    # 1024-col tiles (>=512-wide DMAs reach 85%+ of HBM roofline; the padded
    # row-tile count is a multiple of 4, so both v7x TCs stay busy on the
    # "parallel" axis).  Awkward B is padded, and padded columns are masked
    # out of the LSE in-kernel instead of shrinking the tiles.
    if row_tile is None:
        row_tile = B if B <= 256 else 256
    bp = _round_up(B, row_tile)
    if col_tile is None:
        col_tile = bp if bp <= 1024 else 1024
    bp = _round_up(bp, row_tile * col_tile // math.gcd(row_tile, col_tile))
    padded = bp != B
    n_row = bp // row_tile
    n_col = bp // col_tile

    # --- host-side glue (O(B*D) / O(nnz), hoisted out of the kernel) ---------
    out_p = out.astype(jnp.float32)
    if padded:
        out_p = jnp.pad(out_p, ((0, bp - B), (0, 0)))
    # Hoisted transform: (out @ W) / temperature, bf16 MXU operands with f32
    # accumulation; the temperature scale is folded in exactly once.
    transformed = jnp.dot(out_p.astype(jnp.bfloat16), W.astype(jnp.bfloat16),
                          preferred_element_type=jnp.float32)
    q_b = (transformed * (1.0 / float(temperature))).astype(jnp.bfloat16)
    k_b = out_p.astype(jnp.bfloat16)

    # Dense positive-pair counts as int8 (half of bf16's HBM traffic; exact
    # only up to 127 duplicates of one (row, col) entry) and per-row counts
    # via an O(nnz) segment-sum so the kernel doesn't re-reduce the mask.
    pos_mask = (jnp.zeros((bp, bp), jnp.int32)
                .at[rows, cols].add(1)).astype(jnp.int8)
    pcnt = jax.ops.segment_sum(jnp.ones_like(rows, dtype=jnp.float32), rows,
                               num_segments=bp).reshape(bp, 1)
    # TODO(synk): scalar-prefetched COO / packed bitmask would remove the
    # O(B^2) dense mask entirely for very large batches.

    # --- pipelining depth & VMEM budget --------------------------------------
    def _footprint(bufs):
        return (2 * row_tile * D * 2                     # q (bf16)
                + bufs * (col_tile * D * 2               # k (bf16)
                          + row_tile * col_tile)         # pos (int8)
                + 2 * 2 * row_tile * 4                   # pcnt + out (f32)
                + row_tile * 128 * 4                     # acc scratch (lane pad)
                + 5 * row_tile * col_tile * 4)           # in-kernel f32 temps

    # Small-D tiles are compute-light: a third buffer on the streamed inputs
    # hides exposed DMA, VMEM permitting.
    stream_bufs = 3 if (n_col >= 3 and D <= 512
                        and _footprint(3) < (40 << 20)) else 2
    tile_bytes = _footprint(stream_bufs)
    # Cap well below v7x's 64 MiB/TC so the compiler keeps internal headroom.
    vmem_limit = int(min(48 << 20, max(16 << 20, 2 * tile_bytes)))

    kernel = functools.partial(
        _biotic_loss_kernel,
        row_tile=int(row_tile), col_tile=int(col_tile),
        batch=int(B), padded=bool(padded))

    def _stream_spec(shape, index_map):
        if stream_bufs == 2:
            return pl.BlockSpec(shape, index_map)
        return pl.BlockSpec(shape, index_map,
                            pipeline_mode=pl.Buffered(stream_bufs))

    num = pl.pallas_call(
        kernel,
        out_shape=jax.ShapeDtypeStruct((bp, 1), jnp.float32),
        grid_spec=pltpu.PrefetchScalarGridSpec(
            num_scalar_prefetch=0,
            grid=(n_row, n_col),
            in_specs=[
                pl.BlockSpec((row_tile, D), lambda i, j: (i, 0)),        # q
                _stream_spec((col_tile, D), lambda i, j: (j, 0)),        # k
                _stream_spec((row_tile, col_tile), lambda i, j: (i, j)),  # pos
                pl.BlockSpec((row_tile, 1), lambda i, j: (i, 0)),        # pcnt
            ],
            out_specs=pl.BlockSpec((row_tile, 1), lambda i, j: (i, 0)),
            scratch_shapes=[pltpu.VMEM((row_tile, 4), jnp.float32)]),
        compiler_params=pltpu.CompilerParams(
            dimension_semantics=("parallel", "arbitrary"),
            vmem_limit_bytes=vmem_limit),
    )(q_b, k_b, pos_mask, pcnt)

    loss = -jnp.sum(num) / max(nnz, 1)   # empty positive set -> 0 (ref: NaN)
    if scale_by_temperature:
        loss = loss * temperature
    return loss


def _reference_loss(out, W, rows, cols, temperature, scale_by_temperature):
    """Literal translation of the torch forward (same bf16 operand choices)."""
    B = out.shape[0]
    out_b = out.astype(jnp.bfloat16)
    transformed = jnp.dot(out_b, W.astype(jnp.bfloat16),
                          preferred_element_type=jnp.float32)
    sim = jax.lax.dot_general(
        (transformed / temperature).astype(jnp.bfloat16), out_b,
        dimension_numbers=(((1,), (1,)), ((), ())),
        preferred_element_type=jnp.float32)
    sim = sim - jnp.max(sim, axis=1, keepdims=True)
    logits_mask = 1.0 - jnp.eye(B, dtype=jnp.float32)
    denom = jnp.sum(jnp.exp(sim) * logits_mask, axis=1, keepdims=True)
    log_probs = sim - jnp.log(denom)
    loss = -jnp.mean(log_probs[rows, cols])
    if scale_by_temperature:
        loss = loss * temperature
    return loss


if __name__ == "__main__":
    B, D = 8, 32
    temperature = 0.07
    key = jax.random.PRNGKey(0)
    out = jax.random.normal(key, (B, D), dtype=jnp.float32)
    # L2-normalize the embeddings (standard for contrastive losses): raw
    # N(0,1) embeddings at T=0.07 underflow every off-diagonal exp() to zero,
    # driving both the torch reference and any kernel to -inf / NaN.
    out = out / jnp.linalg.norm(out, axis=1, keepdims=True)

    # Parameter init: identity (init_weights='identity' in the module).
    W = jnp.eye(D, dtype=jnp.float32)

    # Deterministic sparse positive-pair mask in COO form (mirrors
    # mask.storage.row()/col()): same-"label" samples are positives.
    labels = jnp.array([0, 0, 1, 1, 2, 2, 3, 3], dtype=jnp.int32)
    same = (labels[:, None] == labels[None, :]) & (~jnp.eye(B, dtype=bool))
    rows, cols = jnp.nonzero(same, size=int(jnp.sum(same)))
    rows = rows.astype(jnp.int32)
    cols = cols.astype(jnp.int32)

    loss = biotic_loss(out, W, rows, cols, temperature=temperature,
                       scale_by_temperature=True)
    loss = jax.block_until_ready(loss)

    ref = _reference_loss(out, W, rows, cols, temperature, True)
    assert bool(jnp.isfinite(loss)), loss
    assert jnp.allclose(loss, ref, rtol=5e-4, atol=5e-4), (loss, ref)

    print("KERNEL_OK")
</pallas_src>

<mosaic_0001>
module attributes {stable_mosaic.version = 11 : i64} {
  func.func @_biotic_loss_kernel(%arg0: i32, %arg1: i32, %arg2: memref<8x32xbf16, #tpu.memory_space<vmem>>, %arg3: memref<8x32xbf16, #tpu.memory_space<vmem>>, %arg4: memref<8x8xi8, #tpu.memory_space<vmem>>, %arg5: memref<8x1xf32, #tpu.memory_space<vmem>>, %arg6: memref<8x1xf32, #tpu.memory_space<vmem>>, %arg7: memref<8x4xf32, #tpu.memory_space<vmem>>) attributes {dimension_semantics = [#tpu.dimension_semantics<parallel>, #tpu.dimension_semantics<arbitrary>], iteration_bounds = array<i64: 1, 1>, scalar_prefetch = 0 : i64, scratch_operands = 1 : i64, tpu.core_type = #tpu.core_type<tc>, window_params = [{transform_indices = @transform_0, window_bounds = array<i64: 8, 32>}, {transform_indices = @transform_1, window_bounds = array<i64: 8, 32>}, {transform_indices = @transform_2, window_bounds = array<i64: 8, 8>}, {transform_indices = @transform_3, window_bounds = array<i64: 8, 1>}, {transform_indices = @transform_4, window_bounds = array<i64: 8, 1>}]} {
    %c0_i32 = arith.constant 0 : i32
    %0 = arith.cmpi eq, %arg1, %c0_i32 : i32
    %1 = arith.extui %0 : i1 to i32
    %c0_i32_0 = arith.constant 0 : i32
    %2 = arith.cmpi ne, %1, %c0_i32_0 : i32
    scf.if %2 {
      %33 = tpu.iota {dimensions = array<i32: 1>} : vector<8x4xi32>
      %c0_i32_17 = arith.constant 0 : i32
      %34 = vector.broadcast %c0_i32_17 : i32 to vector<8x4xi32>
      %35 = arith.cmpi eq, %33, %34 : vector<8x4xi32>
      %cst_18 = arith.constant 0xFF800000 : f32
      %cst_19 = arith.constant 0.000000e+00 : f32
      %36 = vector.broadcast %cst_18 : f32 to vector<8x4xf32>
      %37 = vector.broadcast %cst_19 : f32 to vector<8x4xf32>
      %38 = arith.select %35, %36, %37 : vector<8x4xi1>, vector<8x4xf32>
      %c0_20 = arith.constant 0 : index
      %c0_21 = arith.constant 0 : index
      %39 = vector.load %arg7[%c0_20, %c0_21] : memref<8x4xf32, #tpu.memory_space<vmem>>, vector<8x4xf32>
      tpu.vector_store %arg7[%c0_20, %c0_21], %38 {strides = array<i32>} : memref<8x4xf32, #tpu.memory_space<vmem>>, vector<8x4xf32>,
    } else {
    }
    %c0 = arith.constant 0 : index
    %c0_1 = arith.constant 0 : index
    %3 = vector.load %arg2[%c0, %c0_1] : memref<8x32xbf16, #tpu.memory_space<vmem>>, vector<8x32xbf16>
    %c0_2 = arith.constant 0 : index
    %c0_3 = arith.constant 0 : index
    %4 = vector.load %arg3[%c0_2, %c0_3] : memref<8x32xbf16, #tpu.memory_space<vmem>>, vector<8x32xbf16>
    %cst = arith.constant dense<0.000000e+00> : vector<8x8xf32>
    %5 = tpu.matmul %3, %4, %cst {dimension_numbers = #tpu.dot_dimension_numbers<[1], [1], [0], [0], [0, 0, 1, 0], [], []>} : vector<8x32xbf16>, vector<8x32xbf16>, vector<8x8xf32> -> vector<8x8xf32>
    %c0_4 = arith.constant 0 : index
    %c0_5 = arith.constant 0 : index
    %6 = vector.load %arg7[%c0_4, %c0_5] : memref<8x4xf32, #tpu.memory_space<vmem>>, vector<8x4xf32>
    %7 = vector.extract_strided_slice %6 {offsets = [0, 0], sizes = [8, 1], strides = [1, 1]} : vector<8x4xf32> to vector<8x1xf32>
    %8 = vector.extract_strided_slice %6 {offsets = [0, 1], sizes = [8, 1], strides = [1, 1]} : vector<8x4xf32> to vector<8x1xf32>
    %9 = vector.extract_strided_slice %6 {offsets = [0, 2], sizes = [8, 1], strides = [1, 1]} : vector<8x4xf32> to vector<8x1xf32>
    %c0_6 = arith.constant 0 : index
    %c0_7 = arith.constant 0 : index
    %10 = vector.load %arg4[%c0_6, %c0_7] : memref<8x8xi8, #tpu.memory_space<vmem>>, vector<8x8xi8>
    %11 = arith.sitofp %10 : vector<8x8xi8> to vector<8x8xf32>
    %12 = arith.mulf %11, %5 : vector<8x8xf32>
    %cst_8 = arith.constant dense<0.000000e+00> : vector<8xf32>
    %13 = vector.multi_reduction <add>, %12, %cst_8 [1] : vector<8x8xf32> to vector<8xf32>
    %14 = vector.shape_cast %13 : vector<8xf32> to vector<8x1xf32>
    %15 = arith.addf %9, %14 : vector<8x1xf32>
    %c8_i32 = arith.constant 8 : i32
    %16 = arith.muli %arg0, %c8_i32 : i32
    %c1_i32 = arith.constant 1 : i32
    %17 = arith.addi %arg1, %c1_i32 : i32
    %c8_i32_9 = arith.constant 8 : i32
    %18 = arith.muli %17, %c8_i32_9 : i32
    %19 = arith.cmpi slt, %16, %18 : i32
    %c8_i32_10 = arith.constant 8 : i32
    %20 = arith.muli %arg1, %c8_i32_10 : i32
    %c1_i32_11 = arith.constant 1 : i32
    %21 = arith.addi %arg0, %c1_i32_11 : i32
    %c8_i32_12 = arith.constant 8 : i32
    %22 = arith.muli %21, %c8_i32_12 : i32
    %23 = arith.cmpi slt, %20, %22 : i32
    %24 = arith.andi %19, %23 : i1
    %25 = arith.extui %24 : i1 to i32
    %c0_i32_13 = arith.constant 0 : i32
    %26 = arith.cmpi ne, %25, %c0_i32_13 : i32
    scf.if %26 {
      %c8_i32_17 = arith.constant 8 : i32
      %33 = arith.muli %arg0, %c8_i32_17 : i32
      %34 = tpu.iota {dimensions = array<i32: 0>} : vector<8x8xi32>
      %35 = vector.broadcast %33 : i32 to vector<8x8xi32>
      %36 = arith.addi %35, %34 : vector<8x8xi32>
      %c8_i32_18 = arith.constant 8 : i32
      %37 = arith.muli %arg1, %c8_i32_18 : i32
      %38 = tpu.iota {dimensions = array<i32: 1>} : vector<8x8xi32>
      %39 = vector.broadcast %37 : i32 to vector<8x8xi32>
      %40 = arith.addi %39, %38 : vector<8x8xi32>
      %cst_19 = arith.constant dense<0xFF800000> : vector<8xf32>
      %41 = vector.multi_reduction <maximumf>, %5, %cst_19 [1] : vector<8x8xf32> to vector<8xf32>
      %42 = vector.shape_cast %41 : vector<8xf32> to vector<8x1xf32>
      %43 = arith.maximumf %7, %42 : vector<8x1xf32>
      %44 = arith.cmpi eq, %36, %40 : vector<8x8xi32>
      %45 = vector.broadcast %43 : vector<8x1xf32> to vector<8x8xf32>
      %46 = arith.subf %5, %45 : vector<8x8xf32>
      %47 = math.exp %46 : vector<8x8xf32>
      %cst_20 = arith.constant 0.000000e+00 : f32
      %48 = vector.broadcast %cst_20 : f32 to vector<8x8xf32>
      %49 = arith.select %44, %48, %47 : vector<8x8xi1>, vector<8x8xf32>
      %50 = arith.subf %7, %43 : vector<8x1xf32>
      %51 = math.exp %50 : vector<8x1xf32>
      %52 = arith.mulf %8, %51 : vector<8x1xf32>
      %cst_21 = arith.constant dense<0.000000e+00> : vector<8xf32>
      %53 = vector.multi_reduction <add>, %49, %cst_21 [1] : vector<8x8xf32> to vector<8xf32>
      %54 = vector.shape_cast %53 : vector<8xf32> to vector<8x1xf32>
      %55 = arith.addf %52, %54 : vector<8x1xf32>
      %56 = tpu.iota {dimensions = array<i32: 1>} : vector<8x4xi32>
      %c0_i32_22 = arith.constant 0 : i32
      %57 = vector.broadcast %c0_i32_22 : i32 to vector<8x4xi32>
      %58 = arith.cmpi eq, %56, %57 : vector<8x4xi32>
      %c1_i32_23 = arith.constant 1 : i32
      %59 = vector.broadcast %c1_i32_23 : i32 to vector<8x4xi32>
      %60 = arith.cmpi eq, %56, %59 : vector<8x4xi32>
      %c2_i32 = arith.constant 2 : i32
      %61 = vector.broadcast %c2_i32 : i32 to vector<8x4xi32>
      %62 = arith.cmpi eq, %56, %61 : vector<8x4xi32>
      %cst_24 = arith.constant 0.000000e+00 : f32
      %63 = vector.shape_cast %15 : vector<8x1xf32> to vector<8x1xf32>
      %64 = vector.broadcast %63 : vector<8x1xf32> to vector<8x4xf32>
      %65 = vector.broadcast %cst_24 : f32 to vector<8x4xf32>
      %66 = arith.select %62, %64, %65 : vector<8x4xi1>, vector<8x4xf32>
      %67 = vector.shape_cast %55 : vector<8x1xf32> to vector<8x1xf32>
      %68 = vector.broadcast %67 : vector<8x1xf32> to vector<8x4xf32>
      %69 = arith.select %60, %68, %66 : vector<8x4xi1>, vector<8x4xf32>
      %70 = vector.shape_cast %43 : vector<8x1xf32> to vector<8x1xf32>
      %71 = vector.broadcast %70 : vector<8x1xf32> to vector<8x4xf32>
      %72 = arith.select %58, %71, %69 : vector<8x4xi1>, vector<8x4xf32>
      %c0_25 = arith.constant 0 : index
      %c0_26 = arith.constant 0 : index
      %73 = vector.load %arg7[%c0_25, %c0_26] : memref<8x4xf32, #tpu.memory_space<vmem>>, vector<8x4xf32>
      tpu.vector_store %arg7[%c0_25, %c0_26], %72 {strides = array<i32>} : memref<8x4xf32, #tpu.memory_space<vmem>>, vector<8x4xf32>,
    } else {
    }
    %true = arith.constant true
    %27 = arith.xori %24, %true : i1
    %28 = arith.extui %27 : i1 to i32
    %c0_i32_14 = arith.constant 0 : i32
    %29 = arith.cmpi ne, %28, %c0_i32_14 : i32
    scf.if %29 {
      %cst_17 = arith.constant dense<0xFF800000> : vector<8xf32>
      %33 = vector.multi_reduction <maximumf>, %5, %cst_17 [1] : vector<8x8xf32> to vector<8xf32>
      %34 = vector.shape_cast %33 : vector<8xf32> to vector<8x1xf32>
      %35 = arith.maximumf %7, %34 : vector<8x1xf32>
      %36 = vector.broadcast %35 : vector<8x1xf32> to vector<8x8xf32>
      %37 = arith.subf %5, %36 : vector<8x8xf32>
      %38 = math.exp %37 : vector<8x8xf32>
      %39 = arith.subf %7, %35 : vector<8x1xf32>
      %40 = math.exp %39 : vector<8x1xf32>
      %41 = arith.mulf %8, %40 : vector<8x1xf32>
      %cst_18 = arith.constant dense<0.000000e+00> : vector<8xf32>
      %42 = vector.multi_reduction <add>, %38, %cst_18 [1] : vector<8x8xf32> to vector<8xf32>
      %43 = vector.shape_cast %42 : vector<8xf32> to vector<8x1xf32>
      %44 = arith.addf %41, %43 : vector<8x1xf32>
      %45 = tpu.iota {dimensions = array<i32: 1>} : vector<8x4xi32>
      %c0_i32_19 = arith.constant 0 : i32
      %46 = vector.broadcast %c0_i32_19 : i32 to vector<8x4xi32>
      %47 = arith.cmpi eq, %45, %46 : vector<8x4xi32>
      %c1_i32_20 = arith.constant 1 : i32
      %48 = vector.broadcast %c1_i32_20 : i32 to vector<8x4xi32>
      %49 = arith.cmpi eq, %45, %48 : vector<8x4xi32>
      %c2_i32 = arith.constant 2 : i32
      %50 = vector.broadcast %c2_i32 : i32 to vector<8x4xi32>
      %51 = arith.cmpi eq, %45, %50 : vector<8x4xi32>
      %cst_21 = arith.constant 0.000000e+00 : f32
      %52 = vector.shape_cast %15 : vector<8x1xf32> to vector<8x1xf32>
      %53 = vector.broadcast %52 : vector<8x1xf32> to vector<8x4xf32>
      %54 = vector.broadcast %cst_21 : f32 to vector<8x4xf32>
      %55 = arith.select %51, %53, %54 : vector<8x4xi1>, vector<8x4xf32>
      %56 = vector.shape_cast %44 : vector<8x1xf32> to vector<8x1xf32>
      %57 = vector.broadcast %56 : vector<8x1xf32> to vector<8x4xf32>
      %58 = arith.select %49, %57, %55 : vector<8x4xi1>, vector<8x4xf32>
      %59 = vector.shape_cast %35 : vector<8x1xf32> to vector<8x1xf32>
      %60 = vector.broadcast %59 : vector<8x1xf32> to vector<8x4xf32>
      %61 = arith.select %47, %60, %58 : vector<8x4xi1>, vector<8x4xf32>
      %c0_22 = arith.constant 0 : index
      %c0_23 = arith.constant 0 : index
      %62 = vector.load %arg7[%c0_22, %c0_23] : memref<8x4xf32, #tpu.memory_space<vmem>>, vector<8x4xf32>
      tpu.vector_store %arg7[%c0_22, %c0_23], %61 {strides = array<i32>} : memref<8x4xf32, #tpu.memory_space<vmem>>, vector<8x4xf32>,
    } else {
    }
    %c0_i32_15 = arith.constant 0 : i32
    %30 = arith.cmpi eq, %arg1, %c0_i32_15 : i32
    %31 = arith.extui %30 : i1 to i32
    %c0_i32_16 = arith.constant 0 : i32
    %32 = arith.cmpi ne, %31, %c0_i32_16 : i32
    scf.if %32 {
      %c0_17 = arith.constant 0 : index
      %c0_18 = arith.constant 0 : index
      %33 = vector.load %arg7[%c0_17, %c0_18] : memref<8x4xf32, #tpu.memory_space<vmem>>, vector<8x4xf32>
      %34 = vector.extract_strided_slice %33 {offsets = [0, 0], sizes = [8, 1], strides = [1, 1]} : vector<8x4xf32> to vector<8x1xf32>
      %35 = vector.extract_strided_slice %33 {offsets = [0, 1], sizes = [8, 1], strides = [1, 1]} : vector<8x4xf32> to vector<8x1xf32>
      %36 = math.log %35 : vector<8x1xf32>
      %37 = arith.addf %34, %36 : vector<8x1xf32>
      %c0_19 = arith.constant 0 : index
      %c0_20 = arith.constant 0 : index
      %38 = vector.load %arg5[%c0_19, %c0_20] : memref<8x1xf32, #tpu.memory_space<vmem>>, vector<8x1xf32>
      %39 = vector.extract_strided_slice %33 {offsets = [0, 2], sizes = [8, 1], strides = [1, 1]} : vector<8x4xf32> to vector<8x1xf32>
      %cst_21 = arith.constant 0.000000e+00 : f32
      %40 = vector.broadcast %cst_21 : f32 to vector<8x1xf32>
      %41 = arith.cmpf ogt, %38, %40 : vector<8x1xf32>
      %42 = arith.mulf %38, %37 : vector<8x1xf32>
      %cst_22 = arith.constant 0.000000e+00 : f32
      %43 = vector.broadcast %cst_22 : f32 to vector<8x1xf32>
      %44 = arith.select %41, %42, %43 : vector<8x1xi1>, vector<8x1xf32>
      %45 = arith.subf %39, %44 : vector<8x1xf32>
      %c0_23 = arith.constant 0 : index
      %c0_24 = arith.constant 0 : index
      %46 = vector.load %arg6[%c0_23, %c0_24] : memref<8x1xf32, #tpu.memory_space<vmem>>, vector<8x1xf32>
      tpu.vector_store %arg6[%c0_23, %c0_24], %45 {strides = array<i32>} : memref<8x1xf32, #tpu.memory_space<vmem>>, vector<8x1xf32>,
    } else {
    }
    return
  }
  func.func @transform_0(%arg0: i32, %arg1: i32) -> (i32, i32) {
    %c0_i32 = arith.constant 0 : i32
    %c0_i32_0 = arith.constant 0 : i32
    return %arg0, %c0_i32 : i32, i32
  }
  func.func @transform_1(%arg0: i32, %arg1: i32) -> (i32, i32) {
    %c0_i32 = arith.constant 0 : i32
    %c0_i32_0 = arith.constant 0 : i32
    return %arg1, %c0_i32 : i32, i32
  }
  func.func @transform_2(%arg0: i32, %arg1: i32) -> (i32, i32) {
    %c0_i32 = arith.constant 0 : i32
    return %arg0, %arg1 : i32, i32
  }
  func.func @transform_3(%arg0: i32, %arg1: i32) -> (i32, i32) {
    %c0_i32 = arith.constant 0 : i32
    %c0_i32_0 = arith.constant 0 : i32
    return %arg0, %c0_i32 : i32, i32
  }
  func.func @transform_4(%arg0: i32, %arg1: i32) -> (i32, i32) {
    %c0_i32 = arith.constant 0 : i32
    %c0_i32_0 = arith.constant 0 : i32
    return %arg0, %c0_i32 : i32, i32
  }
}

</mosaic_0001>

<bundles_post_ra>
// kernel: tpu_custom_call.1
= control target key start
LH: loop header
LB: loop body
LE: loop exit
PB: predicated region body
PF: predicated region fallthrough
CT: control target
= control target key end

     0   :  { %9 = vsyncpa [#allocation4], 0  ;;  %s262_s18 = smov [#allocation3]   ;;  %s326_s0 = inlined_call_operand.vmem [shape: bf16[8,32], index: 0, kind: input, shape index: {}]   ;;  %s327_s1 = inlined_call_operand.vmem [shape: bf16[8,32], index: 1, kind: input, shape index: {}]   ;;  %s328_s2 = inlined_call_operand.hbm [shape: s8[8,8], index: 2, kind: input, shape index: {}]   ;;  %s329_s3 = inlined_call_operand.vmem [shape: f32[8,1], index: 3, kind: input, shape index: {}]   ;;  %s330_s4 = inlined_call_operand.vmem [shape: f32[8,1], index: 4, kind: output, shape index: {}]  }
   0x1   :  { %s19_s17 = sshll.u32 %s328_s2, 4  ;;  %s21_s19 = sshll.u32 %s262_s18, 4  ;;  %s20_s17 = int_to_ptr.hbm [resolvable:$true] %s19_s17  ;;  %s22_s19 = int_to_ptr.vmem [resolvable:$true] %s21_s19 }
   0x2   :  { %24 = dma.hbm_to_vmem [thread:$0]  %s20_s17, 32, %s22_s19, [#allocation4]  }
   0x3   :  { %260 = dma.done.wait [#allocation4], 32  }
   0x4   :  { %261 = vsyncadd [#allocation4], 4294967264  ;;  %v36_v0 = vlaneseq  ;;  %vm40_vm0 = vcmask 31744   ;;  %v263_v2 = vmov 0.0   ;;  %vm44_vm2 = vcmask 261120   ;;  %v196_v45 = vld [vmem:[%s329_s3] sm:$0xff] }
   0x5   :  { %v43_v4 = vld [vmem:[%s327_s1] sm:$0xf]  ;;  %v65_v7 = vld [vmem:[#allocation3] sm:$0x3]  ;;  %vm69_vm3 = vcmask 64512   ;;  %v264_v15 = vmov 0  }
   0x6   :  { %v299_v1 = vand.u32 127, %v36_v0  ;;  %v49_v5 = vsel %vm44_vm2, %v43_v4, 0  ;;  %v42_v6 = vld [vmem:[%s326_s0] sm:$0xf]  ;;  %v66_v8 = vunpack.c.0.s8 %v65_v7  ;;  %226 = vset.pattern.permute.xlu0 %v264_v15  ;;  %s265_s0 = smov 1   ;;  %v266_v22 = vmov 2  }
   0x7   :  { %58 = vmatpush.bf16.xpose.msra.mxu0 %v49_v5  ;;  %227 = vset.pattern.permute.xlu2 %v266_v22  ;;  %v87_v26 = vshrl.u32 %v36_v0, 7  ;;  %v267_v32 = vmov 1   ;;  %s268_s1 = smov 127   ;;  %vm197_vm7 = vcmp.gt.f32.partialorder %v196_v45, 0.0  ;;  %s269_s25 = smov 2   ;;  %vm209_vm8 = vcmask 7168  }
   0x8   :  { %vm38_vm1 = vcmp.eq.s32.totalorder %v299_v1, 0  ;;  %v67_v9 = vcvt.s32.f32 %v66_v8  ;;  %vm122_vm5 = vcmp.eq.s32.totalorder %v299_v1, 2  ;;  %vm121_vm6 = vcmp.eq.s32.totalorder %v299_v1, 1  ;;  %s270_s26 = smov 126  }
   0x9   :  { %v39_v3 = vsel %vm38_vm1, -inf, %v263_v2  ;;  %vm98_vm4 = vcmp.eq.s32.totalorder %v87_v26, %v299_v1 }
   0xa   :  { %41 = vst.msk [vmem:[#allocation2] sm:$0xff] %vm40_vm0, %v39_v3 }
   0xe   :  { %216 = vmatmul.msk.bf16.vlgmr.msra.gmra.mxu0 %vm44_vm2, %v42_v6 }
  0x11   :  { %v64_v16 = vld [vmem:[#allocation2] sm:$0xff] }
  0x8b   :  { %v60_v10 = vpop.f32.mrf.mxu0 }
  0x8c   :  { %v94_v11 = vsel %vm69_vm3, %v60_v10, -inf  ;;  %v68_v12 = vmul.f32 %v67_v9, %v60_v10 }
  0x8d   :  { %95 = vmax.xlane.f32.xlu0 %v94_v11 }
  0x8e   :  { %v70_v13 = vsel %vm69_vm3, %v68_v12, 0.0 }
  0x8f   :  { %71 = vadd.xlane.f32.xlu1 %v70_v13 }
  0x93   :  { %v62_v14 = vpop.f32.mrf.mxu0 }
 0x100   :  { %v96_v17 = vpop.xlane.xlu0 %95 }
 0x101   :  { %v97_v18 = vmax.f32 %v64_v16, %v96_v17 }
 0x102   :  { %v72_v30 = vpop.xlane.xlu1 %71 }
 0x103   :  { %v108_v19 = vsub.f32 %v64_v16, %v97_v18  ;;  %101 = vperm.xlu0 %226, %v97_v18   ;;  %v73_v31 = vadd.f32 %v72_v30, %v64_v16 }
 0x105   :  { %v109_v20 = vmul.f32 1.442695, %v108_v19 }
 0x107   :  { %230 = vpow2.f32 %v109_v20 }
 0x10b   :  { %229 = vset.pattern.permute.xlu0 %v267_v32 }
 0x10d   :  { %v231_v21 = vpop.eup %230 }
 0x10e   :  { %112 = vrot.lane.b32.xlu1 %v231_v21, %s265_s0 }
 0x175   :  { %v102_v23 = vpop.permute.xlu0 %101 }
 0x176   :  { %v104_v24 = vsub.f32 %v60_v10, %v102_v23 }
 0x178   :  { %v105_v25 = vmul.f32 1.442695, %v104_v24 }
 0x17a   :  { %232 = vpow2.f32 %v105_v25 }
 0x180   :  { %v233_v27 = vpop.eup %232  ;;  %v113_v33 = vpop.permute.xlu1 %112 }
 0x181   :  { %v107_v28 = vsel %vm98_vm4, 0.0, %v233_v27  ;;  %v115_v34 = vmul.f32 %v113_v33, %v64_v16 }
 0x182   :  { %v116_v29 = vsel %vm69_vm3, %v107_v28, 0.0 }
 0x183   :  { %117 = vadd.xlane.f32.xlu2 %v116_v29 }
 0x19b   :  { %125 = vperm.xlu2 %227, %v73_v31  }
 0x1a3   :  { %228 = vset.pattern.permute.xlu2 %v267_v32 }
 0x1f6   :  { %v118_v35 = vpop.xlane.xlu2 %117 }
 0x1f7   :  { %v119_v36 = vadd.f32 %v118_v35, %v115_v34 }
 0x1f9   :  { %131 = vperm.xlu2 %228, %v119_v36  }
 0x1fe   :  { %v126_v37 = vpop.permute.xlu2 %125 }
 0x1ff   :  { %v128_v38 = vsel %vm122_vm5, %v126_v37, 0.0 }
 0x253   :  { %v132_v39 = vpop.permute.xlu2 %131 }
 0x254   :  { %v134_v40 = vsel %vm121_vm6, %v132_v39, %v128_v38 }
 0x255   :  { %v135_v41 = vsel %vm38_vm1, %v102_v23, %v134_v40 }
 0x256   :  { %137 = vst.msk [vmem:[#allocation2] sm:$0xff] %vm40_vm0, %v135_v41 }
 0x25d   :  { %v188_v42 = vld [vmem:[#allocation2] sm:$0xff] }
 0x25e   :  { %234 = vlog2.f32 %v188_v42 }
 0x264   :  { %v235_v43 = vpop.eup %234 }
 0x265   :  { %v190_v44 = vmul.f32 0.6931472, %v235_v43 }
 0x267   :  { %192 = vrot.lane.b32.xlu1 %v190_v44, %s268_s1 }
 0x2d9   :  { %v193_v46 = vpop.permute.xlu1 %192 }
 0x2da   :  { %v195_v47 = vadd.f32 %v193_v46, %v188_v42 }
 0x2dc   :  { %v198_v48 = vmul.f32 %v196_v45, %v195_v47 }
 0x2de   :  { %v199_v49 = vsel %vm197_vm7, %v198_v48, 0.0 }
 0x2df   :  { %201 = vrot.lane.b32.xlu2 %v199_v49, %s269_s25 }
 0x339   :  { %v202_v50 = vpop.permute.xlu2 %201 }
 0x33a   :  { %v204_v51 = vsub.f32 %v188_v42, %v202_v50 }
 0x33c   :  { %206 = vrot.lane.b32.xlu1 %v204_v51, %s270_s26 }
 0x3ae   :  { %v207_v52 = vpop.permute.xlu1 %206 }
 0x3af   :  { %210 = vst.msk [vmem:[%s330_s4] sm:$0xff] %vm209_vm8, %v207_v52 }
 0x3b0   :  { %215 = vsyncpa [#allocation4], 1 }

</bundles_post_ra>
